<compile_context>
chip_gen: v5e
topology: v5e:2x2
jax: 0.10.0
libtpu: 0.0.40
codegen_flags: <defaults>
</compile_context>

<pallas_src>
import functools

import jax
import jax.numpy as jnp
from jax.experimental import pallas as pl
from jax.experimental.pallas import tpu as pltpu  # noqa: F401  (kept for TPU-specific tuning hooks)


def _gin_fused_kernel(order, batch,
                      x_ref, rhs_q_ref, rhs_h_ref,
                      w1a_ref, b1a_ref, w2a_ref, b2a_ref,
                      w1b_ref, b1b_ref, w2b_ref, b2b_ref,
                      o_ref):
    # Right-multiply operands, pre-transposed and pre-cast in the wrapper:
    #   feature-major propagation by support A is   act_t @ A.T
    rhs_q = rhs_q_ref[...]            # (N, N) bf16 == A_q.T
    rhs_h = rhs_h_ref[...]            # (N, N) bf16 == A_h.T (== A_q when A_h = A_q.T)

    def backbone(x_t, w1_ref, b1_ref, w2_ref, b2_ref):
        # x_t: (C, N) f32 feature-major activation.  Returns (O, N) f32.
        x_bf = x_t.astype(jnp.bfloat16)
        powers = []
        for rhs in (rhs_q, rhs_h):        # support order matches [A_q, A_h]
            out_bf = x_bf                 # reference resets out = x per support
            for _ in range(order):
                # One bf16 cast per power; the cast value is reused both as the
                # next propagation input and as a block of the packed operand.
                out_bf = jnp.dot(out_bf, rhs,
                                 preferred_element_type=jnp.float32
                                 ).astype(jnp.bfloat16)
                powers.append(out_bf)

        # Sublane-axis concat of propagated features -> single wide-K matmul
        # against the un-split PyTorch (H, 2*order*C) Linear-1 weight.
        packed = jnp.concatenate(powers, axis=0)             # (2*order*C, N) bf16
        h = jnp.dot(w1_ref[...], packed,
                    preferred_element_type=jnp.float32) + b1_ref[...]   # (H, N) f32

        # LayerNorm over the hidden axis (axis 0 here), eps=1e-8, no affine.
        mu = jnp.mean(h, axis=0, keepdims=True)
        var = jnp.mean(jnp.square(h - mu), axis=0, keepdims=True)
        hn = (h - mu) * jax.lax.rsqrt(var + 1e-8)

        # TODO(synk): Dropout(p=0.3) is identity at inference; not implemented.
        r = jnp.maximum(hn, 0.0).astype(jnp.bfloat16)
        y = jnp.dot(w2_ref[...], r,
                    preferred_element_type=jnp.float32) + b2_ref[...]    # (O, N) f32
        return y

    # Static unroll over the (small) batch: no grid, no per-step overhead, and
    # two independent dependence chains for the LLO scheduler to interleave.
    for b in range(batch):
        x_t = x_ref[b]                                            # (T, N) == X_S[b].T
        h1 = backbone(x_t, w1a_ref, b1a_ref, w2a_ref, b2a_ref)    # (H, N)  GNN1
        y2 = backbone(h1, w1b_ref, b1b_ref, w2b_ref, b2b_ref)     # (T, N)  GNN3
        o_ref[b] = y2.astype(o_ref.dtype)                         # already (T, N)


def gin_forward(X, adj, params1, params3, *, order, A_h=None):
    """X: (B, T, N, F); adj: (N, N) forward random-walk matrix A_q.
    A_h defaults to A_q.T (reference behaviour for a single 2-D adj); pass it
    explicitly if the config uses an independent backward matrix.
    Returns [X_res] with X_res: (B, T, N)."""
    B, T, N, _ = X.shape
    x = X[..., 0]                         # (B, T, N); no wrapper permutes needed.

    A_q = adj
    if A_h is None:
        A_h = A_q.T
    # Right-multiply operands for the feature-major propagation (act @ A.T),
    # computed once here so the kernel never transposes anything.
    rhs_q = A_q.T.astype(jnp.bfloat16)    # == adj.T
    rhs_h = A_h.T.astype(jnp.bfloat16)    # == adj when A_h = A_q.T

    w1a, b1a, w2a, b2a = params1
    w1b, b1b, w2b, b2b = params3
    # bf16 once for all matmul weights; biases stay f32.
    w1a_bf = w1a.astype(jnp.bfloat16)
    w2a_bf = w2a.astype(jnp.bfloat16)
    w1b_bf = w1b.astype(jnp.bfloat16)
    w2b_bf = w2b.astype(jnp.bfloat16)

    operands = (x, rhs_q, rhs_h,
                w1a_bf, b1a, w2a_bf, b2a,
                w1b_bf, b1b, w2b_bf, b2b)

    # Advisory cost estimate for XLA's scheduler.
    def backbone_flops(C, H, O):
        prop = 2 * order * 2 * C * N * N        # propagation matmuls
        lin1 = 2 * H * (2 * order * C) * N      # packed Linear-1
        lin2 = 2 * O * H * N                    # Linear-2
        return prop + lin1 + lin2

    H1, O1 = w1a.shape[0], w2a.shape[0]
    H2, O2 = w1b.shape[0], w2b.shape[0]
    flops = B * (backbone_flops(T, H1, O1) + backbone_flops(O1, H2, O2))
    bytes_accessed = (sum(int(a.size) * jnp.dtype(a.dtype).itemsize for a in operands)
                      + B * T * N * jnp.dtype(X.dtype).itemsize)
    cost = pl.CostEstimate(flops=int(flops),
                           transcendentals=int(2 * B * N),      # rsqrt per (node, backbone)
                           bytes_accessed=int(bytes_accessed))

    kernel = functools.partial(_gin_fused_kernel, order, B)

    # Single invocation, whole-array VMEM refs (no grid, no BlockSpecs needed:
    # every block equals the full array, which satisfies the (8,128) rule).
    out = pl.pallas_call(
        kernel,
        out_shape=jax.ShapeDtypeStruct((B, T, N), X.dtype),
        cost_estimate=cost,
    )(*operands)
    return [out]


def init_backbone_params(key, in_dim, hidden_dim, out_dim, order, support_len=2):
    """Weights in PyTorch (out, in) orientation.  Linear-1 keeps the reference
    concat layout: columns ordered [A_q^1..A_q^order, A_h^1..A_h^order] blocks
    of width in_dim (must match this order when porting real checkpoints)."""
    k1, k2, k3, k4 = jax.random.split(key, 4)
    cat_in = order * support_len * in_dim
    w1 = 0.1 * jax.random.normal(k1, (hidden_dim, cat_in), jnp.float32)
    b1 = 0.1 * jax.random.normal(k2, (hidden_dim, 1), jnp.float32)
    w2 = 0.1 * jax.random.normal(k3, (out_dim, hidden_dim), jnp.float32)
    b2 = 0.1 * jax.random.normal(k4, (out_dim, 1), jnp.float32)
    return (w1, b1, w2, b2)


if __name__ == "__main__":
    key = jax.random.PRNGKey(0)
    B, T, N, H, order = 2, 8, 16, 32, 2   # batch, time_dimension, nodes, hidden, order

    k_x, k_a, k_p1, k_p3 = jax.random.split(key, 4)

    # Input (batch, timesteps, nodes, feature=1) and a row-normalized
    # random-walk adjacency matrix (A_q); A_h = A_q.T inside the wrapper.
    X = jax.random.normal(k_x, (B, T, N, 1), jnp.float32)
    adj_raw = jax.random.uniform(k_a, (N, N), jnp.float32)
    adj = adj_raw / jnp.sum(adj_raw, axis=1, keepdims=True)

    # GNN1: in=T, hidden=H, out=H   (support_len=2)
    # GNN3: in=H, hidden=T, out=T
    params1 = init_backbone_params(k_p1, T, H, H, order)
    params3 = init_backbone_params(k_p3, H, T, T, order)

    out = gin_forward(X, adj, params1, params3, order=order)
    X_res = jax.block_until_ready(out[0])
    assert X_res.shape == (B, T, N)
    assert bool(jnp.all(jnp.isfinite(X_res)))
    print("KERNEL_OK")
</pallas_src>

<mosaic_0001>
module attributes {stable_mosaic.version = 11 : i64} {
  func.func @_gin_fused_kernel(%arg0: memref<2x8x16xf32, #tpu.memory_space<vmem>>, %arg1: memref<16x16xbf16, #tpu.memory_space<vmem>>, %arg2: memref<16x16xbf16, #tpu.memory_space<vmem>>, %arg3: memref<32x32xbf16, #tpu.memory_space<vmem>>, %arg4: memref<32x1xf32, #tpu.memory_space<vmem>>, %arg5: memref<32x32xbf16, #tpu.memory_space<vmem>>, %arg6: memref<32x1xf32, #tpu.memory_space<vmem>>, %arg7: memref<8x128xbf16, #tpu.memory_space<vmem>>, %arg8: memref<8x1xf32, #tpu.memory_space<vmem>>, %arg9: memref<8x8xbf16, #tpu.memory_space<vmem>>, %arg10: memref<8x1xf32, #tpu.memory_space<vmem>>, %arg11: memref<2x8x16xf32, #tpu.memory_space<vmem>>) attributes {dimension_semantics = [], scalar_prefetch = 0 : i64, scratch_operands = 0 : i64, tpu.core_type = #tpu.core_type<tc>} {
    %c0 = arith.constant 0 : index
    %c0_0 = arith.constant 0 : index
    %0 = vector.load %arg1[%c0, %c0_0] : memref<16x16xbf16, #tpu.memory_space<vmem>>, vector<16x16xbf16>
    %c0_1 = arith.constant 0 : index
    %c0_2 = arith.constant 0 : index
    %1 = vector.load %arg2[%c0_1, %c0_2] : memref<16x16xbf16, #tpu.memory_space<vmem>>, vector<16x16xbf16>
    %c0_3 = arith.constant 0 : index
    %c0_4 = arith.constant 0 : index
    %c0_5 = arith.constant 0 : index
    %2 = vector.load %arg0[%c0_3, %c0_4, %c0_5] : memref<2x8x16xf32, #tpu.memory_space<vmem>>, vector<1x8x16xf32>
    %3 = vector.shape_cast %2 : vector<1x8x16xf32> to vector<8x16xf32>
    %4 = arith.truncf %3 : vector<8x16xf32> to vector<8x16xbf16>
    %cst = arith.constant dense<0.000000e+00> : vector<8x16xf32>
    %5 = tpu.matmul %4, %0, %cst {dimension_numbers = #tpu.dot_dimension_numbers<[1], [0], [0], [1], [0, 0, 1, 1], [], []>} : vector<8x16xbf16>, vector<16x16xbf16>, vector<8x16xf32> -> vector<8x16xf32>
    %6 = arith.truncf %5 : vector<8x16xf32> to vector<8x16xbf16>
    %cst_6 = arith.constant dense<0.000000e+00> : vector<8x16xf32>
    %7 = tpu.matmul %6, %0, %cst_6 {dimension_numbers = #tpu.dot_dimension_numbers<[1], [0], [0], [1], [0, 0, 1, 1], [], []>} : vector<8x16xbf16>, vector<16x16xbf16>, vector<8x16xf32> -> vector<8x16xf32>
    %8 = arith.truncf %7 : vector<8x16xf32> to vector<8x16xbf16>
    %cst_7 = arith.constant dense<0.000000e+00> : vector<8x16xf32>
    %9 = tpu.matmul %4, %1, %cst_7 {dimension_numbers = #tpu.dot_dimension_numbers<[1], [0], [0], [1], [0, 0, 1, 1], [], []>} : vector<8x16xbf16>, vector<16x16xbf16>, vector<8x16xf32> -> vector<8x16xf32>
    %10 = arith.truncf %9 : vector<8x16xf32> to vector<8x16xbf16>
    %cst_8 = arith.constant dense<0.000000e+00> : vector<8x16xf32>
    %11 = tpu.matmul %10, %1, %cst_8 {dimension_numbers = #tpu.dot_dimension_numbers<[1], [0], [0], [1], [0, 0, 1, 1], [], []>} : vector<8x16xbf16>, vector<16x16xbf16>, vector<8x16xf32> -> vector<8x16xf32>
    %12 = arith.truncf %11 : vector<8x16xf32> to vector<8x16xbf16>
    %13 = tpu.concatenate %6, %8, %10, %12 in 0 : vector<8x16xbf16>, vector<8x16xbf16>, vector<8x16xbf16>, vector<8x16xbf16> -> vector<32x16xbf16>
    %c0_9 = arith.constant 0 : index
    %c0_10 = arith.constant 0 : index
    %14 = vector.load %arg3[%c0_9, %c0_10] : memref<32x32xbf16, #tpu.memory_space<vmem>>, vector<32x32xbf16>
    %cst_11 = arith.constant dense<0.000000e+00> : vector<32x16xf32>
    %15 = tpu.matmul %14, %13, %cst_11 {dimension_numbers = #tpu.dot_dimension_numbers<[1], [0], [0], [1], [0, 0, 1, 1], [], []>} : vector<32x32xbf16>, vector<32x16xbf16>, vector<32x16xf32> -> vector<32x16xf32>
    %c0_12 = arith.constant 0 : index
    %c0_13 = arith.constant 0 : index
    %16 = vector.load %arg4[%c0_12, %c0_13] : memref<32x1xf32, #tpu.memory_space<vmem>>, vector<32x1xf32>
    %17 = vector.broadcast %16 : vector<32x1xf32> to vector<32x16xf32>
    %18 = arith.addf %15, %17 : vector<32x16xf32>
    %cst_14 = arith.constant dense<0.000000e+00> : vector<16xf32>
    %19 = vector.multi_reduction <add>, %18, %cst_14 [0] : vector<32x16xf32> to vector<16xf32>
    %20 = vector.shape_cast %19 : vector<16xf32> to vector<1x16xf32>
    %cst_15 = arith.constant 3.200000e+01 : f32
    %21 = vector.broadcast %cst_15 : f32 to vector<1x16xf32>
    %22 = arith.divf %20, %21 : vector<1x16xf32>
    %23 = vector.broadcast %22 : vector<1x16xf32> to vector<32x16xf32>
    %24 = arith.subf %18, %23 : vector<32x16xf32>
    %25 = arith.mulf %24, %24 : vector<32x16xf32>
    %cst_16 = arith.constant dense<0.000000e+00> : vector<16xf32>
    %26 = vector.multi_reduction <add>, %25, %cst_16 [0] : vector<32x16xf32> to vector<16xf32>
    %27 = vector.shape_cast %26 : vector<16xf32> to vector<1x16xf32>
    %cst_17 = arith.constant 3.200000e+01 : f32
    %28 = vector.broadcast %cst_17 : f32 to vector<1x16xf32>
    %29 = arith.divf %27, %28 : vector<1x16xf32>
    %30 = vector.broadcast %22 : vector<1x16xf32> to vector<32x16xf32>
    %31 = arith.subf %18, %30 : vector<32x16xf32>
    %cst_18 = arith.constant 9.99999993E-9 : f32
    %32 = vector.broadcast %cst_18 : f32 to vector<1x16xf32>
    %33 = arith.addf %29, %32 : vector<1x16xf32>
    %34 = math.rsqrt %33 : vector<1x16xf32>
    %35 = vector.broadcast %34 : vector<1x16xf32> to vector<32x16xf32>
    %36 = arith.mulf %31, %35 : vector<32x16xf32>
    %cst_19 = arith.constant 0.000000e+00 : f32
    %37 = vector.broadcast %cst_19 : f32 to vector<32x16xf32>
    %38 = arith.maximumf %36, %37 : vector<32x16xf32>
    %39 = arith.truncf %38 : vector<32x16xf32> to vector<32x16xbf16>
    %c0_20 = arith.constant 0 : index
    %c0_21 = arith.constant 0 : index
    %40 = vector.load %arg5[%c0_20, %c0_21] : memref<32x32xbf16, #tpu.memory_space<vmem>>, vector<32x32xbf16>
    %cst_22 = arith.constant dense<0.000000e+00> : vector<32x16xf32>
    %41 = tpu.matmul %40, %39, %cst_22 {dimension_numbers = #tpu.dot_dimension_numbers<[1], [0], [0], [1], [0, 0, 1, 1], [], []>} : vector<32x32xbf16>, vector<32x16xbf16>, vector<32x16xf32> -> vector<32x16xf32>
    %c0_23 = arith.constant 0 : index
    %c0_24 = arith.constant 0 : index
    %42 = vector.load %arg6[%c0_23, %c0_24] : memref<32x1xf32, #tpu.memory_space<vmem>>, vector<32x1xf32>
    %43 = vector.broadcast %42 : vector<32x1xf32> to vector<32x16xf32>
    %44 = arith.addf %41, %43 : vector<32x16xf32>
    %45 = arith.truncf %44 : vector<32x16xf32> to vector<32x16xbf16>
    %cst_25 = arith.constant dense<0.000000e+00> : vector<32x16xf32>
    %46 = tpu.matmul %45, %0, %cst_25 {dimension_numbers = #tpu.dot_dimension_numbers<[1], [0], [0], [1], [0, 0, 1, 1], [], []>} : vector<32x16xbf16>, vector<16x16xbf16>, vector<32x16xf32> -> vector<32x16xf32>
    %47 = arith.truncf %46 : vector<32x16xf32> to vector<32x16xbf16>
    %cst_26 = arith.constant dense<0.000000e+00> : vector<32x16xf32>
    %48 = tpu.matmul %47, %0, %cst_26 {dimension_numbers = #tpu.dot_dimension_numbers<[1], [0], [0], [1], [0, 0, 1, 1], [], []>} : vector<32x16xbf16>, vector<16x16xbf16>, vector<32x16xf32> -> vector<32x16xf32>
    %49 = arith.truncf %48 : vector<32x16xf32> to vector<32x16xbf16>
    %cst_27 = arith.constant dense<0.000000e+00> : vector<32x16xf32>
    %50 = tpu.matmul %45, %1, %cst_27 {dimension_numbers = #tpu.dot_dimension_numbers<[1], [0], [0], [1], [0, 0, 1, 1], [], []>} : vector<32x16xbf16>, vector<16x16xbf16>, vector<32x16xf32> -> vector<32x16xf32>
    %51 = arith.truncf %50 : vector<32x16xf32> to vector<32x16xbf16>
    %cst_28 = arith.constant dense<0.000000e+00> : vector<32x16xf32>
    %52 = tpu.matmul %51, %1, %cst_28 {dimension_numbers = #tpu.dot_dimension_numbers<[1], [0], [0], [1], [0, 0, 1, 1], [], []>} : vector<32x16xbf16>, vector<16x16xbf16>, vector<32x16xf32> -> vector<32x16xf32>
    %53 = arith.truncf %52 : vector<32x16xf32> to vector<32x16xbf16>
    %54 = tpu.concatenate %47, %49, %51, %53 in 0 : vector<32x16xbf16>, vector<32x16xbf16>, vector<32x16xbf16>, vector<32x16xbf16> -> vector<128x16xbf16>
    %c0_29 = arith.constant 0 : index
    %c0_30 = arith.constant 0 : index
    %55 = vector.load %arg7[%c0_29, %c0_30] : memref<8x128xbf16, #tpu.memory_space<vmem>>, vector<8x128xbf16>
    %cst_31 = arith.constant dense<0.000000e+00> : vector<8x16xf32>
    %56 = tpu.matmul %55, %54, %cst_31 {dimension_numbers = #tpu.dot_dimension_numbers<[1], [0], [0], [1], [0, 0, 1, 1], [], []>} : vector<8x128xbf16>, vector<128x16xbf16>, vector<8x16xf32> -> vector<8x16xf32>
    %c0_32 = arith.constant 0 : index
    %c0_33 = arith.constant 0 : index
    %57 = vector.load %arg8[%c0_32, %c0_33] : memref<8x1xf32, #tpu.memory_space<vmem>>, vector<8x1xf32>
    %58 = vector.broadcast %57 : vector<8x1xf32> to vector<8x16xf32>
    %59 = arith.addf %56, %58 : vector<8x16xf32>
    %cst_34 = arith.constant dense<0.000000e+00> : vector<16xf32>
    %60 = vector.multi_reduction <add>, %59, %cst_34 [0] : vector<8x16xf32> to vector<16xf32>
    %61 = vector.shape_cast %60 : vector<16xf32> to vector<1x16xf32>
    %cst_35 = arith.constant 8.000000e+00 : f32
    %62 = vector.broadcast %cst_35 : f32 to vector<1x16xf32>
    %63 = arith.divf %61, %62 : vector<1x16xf32>
    %64 = vector.broadcast %63 : vector<1x16xf32> to vector<8x16xf32>
    %65 = arith.subf %59, %64 : vector<8x16xf32>
    %66 = arith.mulf %65, %65 : vector<8x16xf32>
    %cst_36 = arith.constant dense<0.000000e+00> : vector<16xf32>
    %67 = vector.multi_reduction <add>, %66, %cst_36 [0] : vector<8x16xf32> to vector<16xf32>
    %68 = vector.shape_cast %67 : vector<16xf32> to vector<1x16xf32>
    %cst_37 = arith.constant 8.000000e+00 : f32
    %69 = vector.broadcast %cst_37 : f32 to vector<1x16xf32>
    %70 = arith.divf %68, %69 : vector<1x16xf32>
    %71 = vector.broadcast %63 : vector<1x16xf32> to vector<8x16xf32>
    %72 = arith.subf %59, %71 : vector<8x16xf32>
    %cst_38 = arith.constant 9.99999993E-9 : f32
    %73 = vector.broadcast %cst_38 : f32 to vector<1x16xf32>
    %74 = arith.addf %70, %73 : vector<1x16xf32>
    %75 = math.rsqrt %74 : vector<1x16xf32>
    %76 = vector.broadcast %75 : vector<1x16xf32> to vector<8x16xf32>
    %77 = arith.mulf %72, %76 : vector<8x16xf32>
    %cst_39 = arith.constant 0.000000e+00 : f32
    %78 = vector.broadcast %cst_39 : f32 to vector<8x16xf32>
    %79 = arith.maximumf %77, %78 : vector<8x16xf32>
    %80 = arith.truncf %79 : vector<8x16xf32> to vector<8x16xbf16>
    %c0_40 = arith.constant 0 : index
    %c0_41 = arith.constant 0 : index
    %81 = vector.load %arg9[%c0_40, %c0_41] : memref<8x8xbf16, #tpu.memory_space<vmem>>, vector<8x8xbf16>
    %cst_42 = arith.constant dense<0.000000e+00> : vector<8x16xf32>
    %82 = tpu.matmul %81, %80, %cst_42 {dimension_numbers = #tpu.dot_dimension_numbers<[1], [0], [0], [1], [0, 0, 1, 1], [], []>} : vector<8x8xbf16>, vector<8x16xbf16>, vector<8x16xf32> -> vector<8x16xf32>
    %c0_43 = arith.constant 0 : index
    %c0_44 = arith.constant 0 : index
    %83 = vector.load %arg10[%c0_43, %c0_44] : memref<8x1xf32, #tpu.memory_space<vmem>>, vector<8x1xf32>
    %84 = vector.broadcast %83 : vector<8x1xf32> to vector<8x16xf32>
    %85 = arith.addf %82, %84 : vector<8x16xf32>
    %c0_45 = arith.constant 0 : index
    %c0_46 = arith.constant 0 : index
    %c0_47 = arith.constant 0 : index
    %86 = vector.load %arg11[%c0_45, %c0_46, %c0_47] : memref<2x8x16xf32, #tpu.memory_space<vmem>>, vector<1x8x16xf32>
    %87 = vector.shape_cast %86 : vector<1x8x16xf32> to vector<8x16xf32>
    %88 = vector.shape_cast %85 : vector<8x16xf32> to vector<1x8x16xf32>
    tpu.vector_store %arg11[%c0_45, %c0_46, %c0_47], %88 {strides = array<i32>} : memref<2x8x16xf32, #tpu.memory_space<vmem>>, vector<1x8x16xf32>,
    %c1 = arith.constant 1 : index
    %c0_48 = arith.constant 0 : index
    %c0_49 = arith.constant 0 : index
    %89 = vector.load %arg0[%c1, %c0_48, %c0_49] : memref<2x8x16xf32, #tpu.memory_space<vmem>>, vector<1x8x16xf32>
    %90 = vector.shape_cast %89 : vector<1x8x16xf32> to vector<8x16xf32>
    %91 = arith.truncf %90 : vector<8x16xf32> to vector<8x16xbf16>
    %cst_50 = arith.constant dense<0.000000e+00> : vector<8x16xf32>
    %92 = tpu.matmul %91, %0, %cst_50 {dimension_numbers = #tpu.dot_dimension_numbers<[1], [0], [0], [1], [0, 0, 1, 1], [], []>} : vector<8x16xbf16>, vector<16x16xbf16>, vector<8x16xf32> -> vector<8x16xf32>
    %93 = arith.truncf %92 : vector<8x16xf32> to vector<8x16xbf16>
    %cst_51 = arith.constant dense<0.000000e+00> : vector<8x16xf32>
    %94 = tpu.matmul %93, %0, %cst_51 {dimension_numbers = #tpu.dot_dimension_numbers<[1], [0], [0], [1], [0, 0, 1, 1], [], []>} : vector<8x16xbf16>, vector<16x16xbf16>, vector<8x16xf32> -> vector<8x16xf32>
    %95 = arith.truncf %94 : vector<8x16xf32> to vector<8x16xbf16>
    %cst_52 = arith.constant dense<0.000000e+00> : vector<8x16xf32>
    %96 = tpu.matmul %91, %1, %cst_52 {dimension_numbers = #tpu.dot_dimension_numbers<[1], [0], [0], [1], [0, 0, 1, 1], [], []>} : vector<8x16xbf16>, vector<16x16xbf16>, vector<8x16xf32> -> vector<8x16xf32>
    %97 = arith.truncf %96 : vector<8x16xf32> to vector<8x16xbf16>
    %cst_53 = arith.constant dense<0.000000e+00> : vector<8x16xf32>
    %98 = tpu.matmul %97, %1, %cst_53 {dimension_numbers = #tpu.dot_dimension_numbers<[1], [0], [0], [1], [0, 0, 1, 1], [], []>} : vector<8x16xbf16>, vector<16x16xbf16>, vector<8x16xf32> -> vector<8x16xf32>
    %99 = arith.truncf %98 : vector<8x16xf32> to vector<8x16xbf16>
    %100 = tpu.concatenate %93, %95, %97, %99 in 0 : vector<8x16xbf16>, vector<8x16xbf16>, vector<8x16xbf16>, vector<8x16xbf16> -> vector<32x16xbf16>
    %c0_54 = arith.constant 0 : index
    %c0_55 = arith.constant 0 : index
    %101 = vector.load %arg3[%c0_54, %c0_55] : memref<32x32xbf16, #tpu.memory_space<vmem>>, vector<32x32xbf16>
    %cst_56 = arith.constant dense<0.000000e+00> : vector<32x16xf32>
    %102 = tpu.matmul %101, %100, %cst_56 {dimension_numbers = #tpu.dot_dimension_numbers<[1], [0], [0], [1], [0, 0, 1, 1], [], []>} : vector<32x32xbf16>, vector<32x16xbf16>, vector<32x16xf32> -> vector<32x16xf32>
    %c0_57 = arith.constant 0 : index
    %c0_58 = arith.constant 0 : index
    %103 = vector.load %arg4[%c0_57, %c0_58] : memref<32x1xf32, #tpu.memory_space<vmem>>, vector<32x1xf32>
    %104 = vector.broadcast %103 : vector<32x1xf32> to vector<32x16xf32>
    %105 = arith.addf %102, %104 : vector<32x16xf32>
    %cst_59 = arith.constant dense<0.000000e+00> : vector<16xf32>
    %106 = vector.multi_reduction <add>, %105, %cst_59 [0] : vector<32x16xf32> to vector<16xf32>
    %107 = vector.shape_cast %106 : vector<16xf32> to vector<1x16xf32>
    %cst_60 = arith.constant 3.200000e+01 : f32
    %108 = vector.broadcast %cst_60 : f32 to vector<1x16xf32>
    %109 = arith.divf %107, %108 : vector<1x16xf32>
    %110 = vector.broadcast %109 : vector<1x16xf32> to vector<32x16xf32>
    %111 = arith.subf %105, %110 : vector<32x16xf32>
    %112 = arith.mulf %111, %111 : vector<32x16xf32>
    %cst_61 = arith.constant dense<0.000000e+00> : vector<16xf32>
    %113 = vector.multi_reduction <add>, %112, %cst_61 [0] : vector<32x16xf32> to vector<16xf32>
    %114 = vector.shape_cast %113 : vector<16xf32> to vector<1x16xf32>
    %cst_62 = arith.constant 3.200000e+01 : f32
    %115 = vector.broadcast %cst_62 : f32 to vector<1x16xf32>
    %116 = arith.divf %114, %115 : vector<1x16xf32>
    %117 = vector.broadcast %109 : vector<1x16xf32> to vector<32x16xf32>
    %118 = arith.subf %105, %117 : vector<32x16xf32>
    %cst_63 = arith.constant 9.99999993E-9 : f32
    %119 = vector.broadcast %cst_63 : f32 to vector<1x16xf32>
    %120 = arith.addf %116, %119 : vector<1x16xf32>
    %121 = math.rsqrt %120 : vector<1x16xf32>
    %122 = vector.broadcast %121 : vector<1x16xf32> to vector<32x16xf32>
    %123 = arith.mulf %118, %122 : vector<32x16xf32>
    %cst_64 = arith.constant 0.000000e+00 : f32
    %124 = vector.broadcast %cst_64 : f32 to vector<32x16xf32>
    %125 = arith.maximumf %123, %124 : vector<32x16xf32>
    %126 = arith.truncf %125 : vector<32x16xf32> to vector<32x16xbf16>
    %c0_65 = arith.constant 0 : index
    %c0_66 = arith.constant 0 : index
    %127 = vector.load %arg5[%c0_65, %c0_66] : memref<32x32xbf16, #tpu.memory_space<vmem>>, vector<32x32xbf16>
    %cst_67 = arith.constant dense<0.000000e+00> : vector<32x16xf32>
    %128 = tpu.matmul %127, %126, %cst_67 {dimension_numbers = #tpu.dot_dimension_numbers<[1], [0], [0], [1], [0, 0, 1, 1], [], []>} : vector<32x32xbf16>, vector<32x16xbf16>, vector<32x16xf32> -> vector<32x16xf32>
    %c0_68 = arith.constant 0 : index
    %c0_69 = arith.constant 0 : index
    %129 = vector.load %arg6[%c0_68, %c0_69] : memref<32x1xf32, #tpu.memory_space<vmem>>, vector<32x1xf32>
    %130 = vector.broadcast %129 : vector<32x1xf32> to vector<32x16xf32>
    %131 = arith.addf %128, %130 : vector<32x16xf32>
    %132 = arith.truncf %131 : vector<32x16xf32> to vector<32x16xbf16>
    %cst_70 = arith.constant dense<0.000000e+00> : vector<32x16xf32>
    %133 = tpu.matmul %132, %0, %cst_70 {dimension_numbers = #tpu.dot_dimension_numbers<[1], [0], [0], [1], [0, 0, 1, 1], [], []>} : vector<32x16xbf16>, vector<16x16xbf16>, vector<32x16xf32> -> vector<32x16xf32>
    %134 = arith.truncf %133 : vector<32x16xf32> to vector<32x16xbf16>
    %cst_71 = arith.constant dense<0.000000e+00> : vector<32x16xf32>
    %135 = tpu.matmul %134, %0, %cst_71 {dimension_numbers = #tpu.dot_dimension_numbers<[1], [0], [0], [1], [0, 0, 1, 1], [], []>} : vector<32x16xbf16>, vector<16x16xbf16>, vector<32x16xf32> -> vector<32x16xf32>
    %136 = arith.truncf %135 : vector<32x16xf32> to vector<32x16xbf16>
    %cst_72 = arith.constant dense<0.000000e+00> : vector<32x16xf32>
    %137 = tpu.matmul %132, %1, %cst_72 {dimension_numbers = #tpu.dot_dimension_numbers<[1], [0], [0], [1], [0, 0, 1, 1], [], []>} : vector<32x16xbf16>, vector<16x16xbf16>, vector<32x16xf32> -> vector<32x16xf32>
    %138 = arith.truncf %137 : vector<32x16xf32> to vector<32x16xbf16>
    %cst_73 = arith.constant dense<0.000000e+00> : vector<32x16xf32>
    %139 = tpu.matmul %138, %1, %cst_73 {dimension_numbers = #tpu.dot_dimension_numbers<[1], [0], [0], [1], [0, 0, 1, 1], [], []>} : vector<32x16xbf16>, vector<16x16xbf16>, vector<32x16xf32> -> vector<32x16xf32>
    %140 = arith.truncf %139 : vector<32x16xf32> to vector<32x16xbf16>
    %141 = tpu.concatenate %134, %136, %138, %140 in 0 : vector<32x16xbf16>, vector<32x16xbf16>, vector<32x16xbf16>, vector<32x16xbf16> -> vector<128x16xbf16>
    %c0_74 = arith.constant 0 : index
    %c0_75 = arith.constant 0 : index
    %142 = vector.load %arg7[%c0_74, %c0_75] : memref<8x128xbf16, #tpu.memory_space<vmem>>, vector<8x128xbf16>
    %cst_76 = arith.constant dense<0.000000e+00> : vector<8x16xf32>
    %143 = tpu.matmul %142, %141, %cst_76 {dimension_numbers = #tpu.dot_dimension_numbers<[1], [0], [0], [1], [0, 0, 1, 1], [], []>} : vector<8x128xbf16>, vector<128x16xbf16>, vector<8x16xf32> -> vector<8x16xf32>
    %c0_77 = arith.constant 0 : index
    %c0_78 = arith.constant 0 : index
    %144 = vector.load %arg8[%c0_77, %c0_78] : memref<8x1xf32, #tpu.memory_space<vmem>>, vector<8x1xf32>
    %145 = vector.broadcast %144 : vector<8x1xf32> to vector<8x16xf32>
    %146 = arith.addf %143, %145 : vector<8x16xf32>
    %cst_79 = arith.constant dense<0.000000e+00> : vector<16xf32>
    %147 = vector.multi_reduction <add>, %146, %cst_79 [0] : vector<8x16xf32> to vector<16xf32>
    %148 = vector.shape_cast %147 : vector<16xf32> to vector<1x16xf32>
    %cst_80 = arith.constant 8.000000e+00 : f32
    %149 = vector.broadcast %cst_80 : f32 to vector<1x16xf32>
    %150 = arith.divf %148, %149 : vector<1x16xf32>
    %151 = vector.broadcast %150 : vector<1x16xf32> to vector<8x16xf32>
    %152 = arith.subf %146, %151 : vector<8x16xf32>
    %153 = arith.mulf %152, %152 : vector<8x16xf32>
    %cst_81 = arith.constant dense<0.000000e+00> : vector<16xf32>
    %154 = vector.multi_reduction <add>, %153, %cst_81 [0] : vector<8x16xf32> to vector<16xf32>
    %155 = vector.shape_cast %154 : vector<16xf32> to vector<1x16xf32>
    %cst_82 = arith.constant 8.000000e+00 : f32
    %156 = vector.broadcast %cst_82 : f32 to vector<1x16xf32>
    %157 = arith.divf %155, %156 : vector<1x16xf32>
    %158 = vector.broadcast %150 : vector<1x16xf32> to vector<8x16xf32>
    %159 = arith.subf %146, %158 : vector<8x16xf32>
    %cst_83 = arith.constant 9.99999993E-9 : f32
    %160 = vector.broadcast %cst_83 : f32 to vector<1x16xf32>
    %161 = arith.addf %157, %160 : vector<1x16xf32>
    %162 = math.rsqrt %161 : vector<1x16xf32>
    %163 = vector.broadcast %162 : vector<1x16xf32> to vector<8x16xf32>
    %164 = arith.mulf %159, %163 : vector<8x16xf32>
    %cst_84 = arith.constant 0.000000e+00 : f32
    %165 = vector.broadcast %cst_84 : f32 to vector<8x16xf32>
    %166 = arith.maximumf %164, %165 : vector<8x16xf32>
    %167 = arith.truncf %166 : vector<8x16xf32> to vector<8x16xbf16>
    %c0_85 = arith.constant 0 : index
    %c0_86 = arith.constant 0 : index
    %168 = vector.load %arg9[%c0_85, %c0_86] : memref<8x8xbf16, #tpu.memory_space<vmem>>, vector<8x8xbf16>
    %cst_87 = arith.constant dense<0.000000e+00> : vector<8x16xf32>
    %169 = tpu.matmul %168, %167, %cst_87 {dimension_numbers = #tpu.dot_dimension_numbers<[1], [0], [0], [1], [0, 0, 1, 1], [], []>} : vector<8x8xbf16>, vector<8x16xbf16>, vector<8x16xf32> -> vector<8x16xf32>
    %c0_88 = arith.constant 0 : index
    %c0_89 = arith.constant 0 : index
    %170 = vector.load %arg10[%c0_88, %c0_89] : memref<8x1xf32, #tpu.memory_space<vmem>>, vector<8x1xf32>
    %171 = vector.broadcast %170 : vector<8x1xf32> to vector<8x16xf32>
    %172 = arith.addf %169, %171 : vector<8x16xf32>
    %c1_90 = arith.constant 1 : index
    %c0_91 = arith.constant 0 : index
    %c0_92 = arith.constant 0 : index
    %173 = vector.load %arg11[%c1_90, %c0_91, %c0_92] : memref<2x8x16xf32, #tpu.memory_space<vmem>>, vector<1x8x16xf32>
    %174 = vector.shape_cast %173 : vector<1x8x16xf32> to vector<8x16xf32>
    %175 = vector.shape_cast %172 : vector<8x16xf32> to vector<1x8x16xf32>
    tpu.vector_store %arg11[%c1_90, %c0_91, %c0_92], %175 {strides = array<i32>} : memref<2x8x16xf32, #tpu.memory_space<vmem>>, vector<1x8x16xf32>,
    return
  }
}

</mosaic_0001>

<bundles_post_ra>
// kernel: tpu_custom_call.1
= control target key start
LH: loop header
LB: loop body
LE: loop exit
PB: predicated region body
PF: predicated region fallthrough
CT: control target
= control target key end

     0   :  { %s1476_s0 = inlined_call_operand.vmem [shape: f32[2,8,16], index: 0, kind: input, shape index: {}]   ;;  %s1477_s1 = inlined_call_operand.vmem [shape: bf16[16,16], index: 1, kind: input, shape index: {}]   ;;  %s1478_s2 = inlined_call_operand.vmem [shape: bf16[16,16], index: 2, kind: input, shape index: {}]   ;;  %s1479_s3 = inlined_call_operand.vmem [shape: bf16[32,32], index: 3, kind: input, shape index: {}]   ;;  %s1480_s4 = inlined_call_operand.vmem [shape: f32[32,1], index: 4, kind: input, shape index: {}]   ;;  %s1481_s5 = inlined_call_operand.vmem [shape: bf16[32,32], index: 5, kind: input, shape index: {}]   ;;  %s1482_s6 = inlined_call_operand.vmem [shape: f32[32,1], index: 6, kind: input, shape index: {}]   ;;  %s1483_s7 = inlined_call_operand.vmem [shape: bf16[8,128], index: 7, kind: input, shape index: {}]   ;;  %s1484_s8 = inlined_call_operand.vmem [shape: f32[8,1], index: 8, kind: input, shape index: {}]   ;;  %s1485_s9 = inlined_call_operand.vmem [shape: bf16[8,8], index: 9, kind: input, shape index: {}]   ;;  %s1486_s10 = inlined_call_operand.vmem [shape: f32[8,1], index: 10, kind: input, shape index: {}]   ;;  %s1487_s11 = inlined_call_operand.hbm [shape: f32[2,8,16], index: 11, kind: output, shape index: {}]  }
   0x1   :  { %v1297_v0 = vld [vmem:[%s1477_s1] sm:$0xff] }
   0x2   :  { %v1302_v1 = vld [vmem:[%s1478_s2] sm:$0xff] }
   0x3   :  { %v44_v2 = vld [vmem:[%s1476_s0] sm:$0xff] }
   0x4   :  { %v45_v3 = vpack.c.bf16 %v44_v2, %v44_v2 }
   0x5   :  { %16 = vsyncpa [#allocation3], 0  ;;  %63 = vmatpush.bf16.msra.mxu0 %v1297_v0  ;;  %100 = vmatpush.bf16.msra.mxu2 %v1302_v1  ;;  %vm52_vm0 = vcmask 130048   ;;  %v1228_v10 = vmov 0   ;;  %v141_v11 = vld [vmem:[%s1480_s4] sm:$0xff]  ;;  %v1323_v12 = vld [vmem:[%s1480_s4 + $0x10] sm:$0xff] }
   0x6   :  { %80 = vmatpush.bf16.msra.mxu1 %v1297_v0  ;;  %117 = vmatpush.bf16.msra.mxu3 %v1302_v1  ;;  %v142_v13 = vld [vmem:[%s1480_s4 + $0x8] sm:$0xff]  ;;  %v144_v14 = vld [vmem:[%s1480_s4 + $0x18] sm:$0xff]  ;;  %v271_v15 = vld [vmem:[%s1482_s6 + $0x10] sm:$0xff]  ;;  %vm130_vm1 = vcmask 1043456   ;;  %vm175_vm2 = vcmask 261120   ;;  %v1229_v37 = vmov 32.0  }
   0x7   :  { %1187 = vset.pattern.permute.xlu0 %v1228_v10  ;;  %1188 = vset.pattern.permute.xlu1 %v1228_v10  ;;  %v272_v16 = vld [vmem:[%s1482_s6 + $0x18] sm:$0xff]  ;;  %v779_v17 = vld [vmem:[%s1482_s6] sm:$0xff]  ;;  %v1174_v32 = vld [vmem:[%s1479_s3 + $0x8] sm:$0xff]  ;;  %1190 = vrcp.f32 %v1229_v37  ;;  %vm554_vm11 = vcmask 64512   ;;  %s1231_s18 = smov [#allocation2]   ;;  %s1084_s21 = sshll.u32 %s1487_s11, 4  ;;  %s1085_s21 = int_to_ptr.hbm [resolvable:$true] %s1084_s21 }
   0x8   :  { %1100 = vmatmul.msk.bf16.vlgmr.msra.gmra.mxu0 %vm52_vm0, %v45_v3  ;;  %1106 = vmatmul.msk.bf16.vlgmr.msra.gmra.mxu2 %vm52_vm0, %v45_v3  ;;  %v548_v25 = vld [vmem:[%s1486_s10] sm:$0xff]  ;;  %s1082_s10 = sshll.u32 %s1231_s18, 4  ;;  %s1232_s22 = smov 128   ;;  %s1083_s10 = int_to_ptr.vmem [resolvable:$true] %s1082_s10 }
   0x9   :  { %343 = vmatpush.bf16.msrb.mxu2 %v1297_v0  ;;  %147 = vperm.xlu0 %1187, %v141_v11   ;;  %v1173_v31 = vld [vmem:[%s1479_s3] sm:$0xff]  ;;  %s1233_s1 = smov 8  }
   0xa   :  { %382 = vmatpush.bf16.msrb.mxu3 %v1297_v0  ;;  %1189 = vset.pattern.permute.xlu2 %v1228_v10 }
   0xb   :  { %157 = vperm.xlu1 %1188, %v1323_v12   ;;  %275 = vperm.xlu2 %1189, %v779_v17  }
   0xd   :  { %v1191_v43 = vpop.eup %1190 }
   0xe   :  { %v215_v47 = vmul.f32 32.0, %v1191_v43  ;;  %vm219_vm3 = vweird.f32 %v1191_v43 }
  0x10   :  { %v216_v54 = vsub.f32 1.0, %v215_v47  ;;  %v1175_v47 = vld [vmem:[%s1481_s5] sm:$0xff] }
  0x11   :  { %152 = vperm.xlu0 %1187, %v142_v13  }
  0x12   :  { %v217_v57 = vmul.f32 %v1191_v43, %v216_v54 }
  0x13   :  { %162 = vperm.xlu1 %1188, %v144_v14  }
  0x14   :  { %v218_v60 = vadd.f32 %v1191_v43, %v217_v57 }
  0x16   :  { %v1360_v63 = vsel %vm219_vm3, %v1191_v43, %v218_v60 }
  0x19   :  { %285 = vperm.xlu0 %1187, %v271_v15  }
  0x1b   :  { %290 = vperm.xlu1 %1188, %v272_v16  }
  0x21   :  { %665 = vperm.xlu0 %1187, %v141_v11  }
  0x23   :  { %670 = vperm.xlu1 %1188, %v142_v13  }
  0x29   :  { %680 = vperm.xlu0 %1187, %v144_v14  }
  0x2b   :  { %785 = vperm.xlu1 %1188, %v779_v17  }
  0x31   :  { %795 = vperm.xlu0 %1187, %v271_v15  }
  0x33   :  { %800 = vperm.xlu1 %1188, %v272_v16  }
  0x39   :  { %551 = vperm.xlu0 %1187, %v548_v25  }
  0x3b   :  { %1054 = vperm.xlu1 %1188, %v548_v25  }
  0x7b   :  { %v148_v34 = vpop.permute.xlu0 %147 }
  0x7d   :  { %v158_v36 = vpop.permute.xlu1 %157 }
  0x83   :  { %v153_v38 = vpop.permute.xlu0 %152 }
  0x85   :  { %v65_v4 = vpop.f32.mrf.mxu0  ;;  %v163_v48 = vpop.permute.xlu1 %162 }
  0x86   :  { %v69_v5 = vpack.c.bf16 %v65_v4, %v65_v4 }
  0x88   :  { %1101 = vmatmul.msk.bf16.vlgmr.msra.gmra.mxu1 %vm52_vm0, %v69_v5 }
  0x8b   :  { %v102_v6 = vpop.f32.mrf.mxu2 }
  0x8c   :  { %v106_v7 = vpack.c.bf16 %v102_v6, %v102_v6 }
  0x8d   :  { %v67_v8 = vpop.f32.mrf.mxu0  ;;  %v291_v57 = vpop.permute.xlu1 %290 }
  0x8e   :  { %1107 = vmatmul.msk.bf16.vlgmr.msra.gmra.mxu3 %vm52_vm0, %v106_v7 }
  0x93   :  { %v104_v9 = vpop.f32.mrf.mxu2 }
 0x105   :  { %v82_v18 = vpop.f32.mrf.mxu1 }
 0x106   :  { %v86_v20 = vpack.c.bf16 %v82_v18, %v82_v18 }
 0x108   :  { %v125_v23 = vunpack.c.l.b16 %v86_v20 }
 0x10a   :  { %v126_v27 = vpack.c.b16 %v125_v23, %v125_v23 }
 0x10c   :  { %v132_v30 = vsel %vm130_vm1, %v69_v5, %v126_v27 }
 0x10d   :  { %v84_v19 = vpop.f32.mrf.mxu1 }
 0x111   :  { %v119_v21 = vpop.f32.mrf.mxu3 }
 0x112   :  { %v123_v22 = vpack.c.bf16 %v119_v21, %v119_v21 }
 0x114   :  { %v128_v24 = vunpack.c.l.b16 %v123_v22 }
 0x116   :  { %v129_v26 = vpack.c.b16 %v128_v24, %v128_v24 }
 0x118   :  { %v135_v28 = vsel %vm130_vm1, %v106_v7, %v129_v26 }
 0x119   :  { %v121_v29 = vpop.f32.mrf.mxu3  ;;  %188 = vmatpush.bf16.msrb.mxu0 %v135_v28  ;;  %v270_v28 = vld [vmem:[%s1482_s6 + $0x8] sm:$0xff] }
 0x11a   :  { %280 = vperm.xlu2 %1189, %v270_v28   ;;  %v489_v29 = vld [vmem:[%s1484_s8] sm:$0xff] }
 0x11d   :  { %189 = vmatpush.bf16.msrb.mxu0 %v132_v30 }
 0x120   :  { %1116 = vmatmul.msk.bf16.vlgmr.msrb.gmra.mxu0 %vm175_vm2, %v1173_v31 }
 0x121   :  { %405 = vmatpush.bf16.msra.mxu0 %v1302_v1 }
 0x122   :  { %492 = vperm.xlu2 %1189, %v489_v29  }
 0x125   :  { %619 = vmatpush.bf16.msrb.mxu0 %v1302_v1 }
 0x12a   :  { %675 = vperm.xlu2 %1189, %v1323_v12   ;;  %v1176_v12 = vld [vmem:[%s1481_s5 + $0x8] sm:$0xff] }
 0x130   :  { %1117 = vmatmul.msk.bf16.gmra.mxu0 %vm175_vm2, %v1174_v32 }
 0x132   :  { %790 = vperm.xlu2 %1189, %v270_v28  }
 0x13a   :  { %1002 = vperm.xlu2 %1189, %v489_v29  }
 0x19d   :  { %v191_v33 = vpop.f32.mrf.mxu0 }
 0x19e   :  { %v192_v41 = vadd.f32 %v191_v33, %v148_v34 }
 0x1a0   :  { %v201_v45 = vsel %vm52_vm0, %v192_v41, 0.0 }
 0x1a5   :  { %v193_v35 = vpop.f32.mrf.mxu0 }
 0x1a6   :  { %v194_v40 = vadd.f32 %v193_v35, %v153_v38 }
 0x1a8   :  { %v202_v44 = vsel %vm52_vm0, %v194_v40, 0.0 }
 0x1a9   :  { %v203_v49 = vadd.f32 %v202_v44, %v201_v45 }
 0x1ad   :  { %v196_v39 = vpop.f32.mrf.mxu0 }
 0x1ae   :  { %v197_v42 = vadd.f32 %v196_v39, %v158_v36 }
 0x1b0   :  { %v204_v46 = vsel %vm52_vm0, %v197_v42, 0.0 }
 0x1b1   :  { %v205_v52 = vadd.f32 %v204_v46, %v203_v49 }
 0x1b5   :  { %v198_v50 = vpop.f32.mrf.mxu0 }
 0x1b6   :  { %v199_v51 = vadd.f32 %v198_v50, %v163_v48  ;;  %v276_v48 = vpop.permute.xlu2 %275 }
 0x1b8   :  { %v206_v53 = vsel %vm52_vm0, %v199_v51, 0.0 }
 0x1b9   :  { %v207_v55 = vadd.f32 %v206_v53, %v205_v52 }
 0x1bb   :  { %v208_v56 = vrot.slane %v207_v55, 4 }
 0x1bd   :  { %v209_v58 = vadd.f32 %v208_v56, %v207_v55  ;;  %v286_v56 = vpop.permute.xlu0 %285 }
 0x1be   :  { %v281_v50 = vpop.permute.xlu2 %280 }
 0x1bf   :  { %v210_v59 = vrot.slane %v209_v58, 2 }
 0x1c1   :  { %v211_v61 = vadd.f32 %v210_v59, %v209_v58 }
 0x1c3   :  { %v212_v62 = vrot.slane %v211_v61, 1 }
 0x1c5   :  { %v213_v2 = vadd.f32 %v212_v62, %v211_v61 }
 0x1c7   :  { %v221_v3 = vmul.f32 %v1360_v63, %v213_v2 }
 0x1c9   :  { %v225_v4 = vsub.f32 %v199_v51, %v221_v3  ;;  %v222_v5 = vsub.f32 %v192_v41, %v221_v3  ;;  %v223_v6 = vsub.f32 %v194_v40, %v221_v3  ;;  %v224_v7 = vsub.f32 %v197_v42, %v221_v3 }
 0x1cb   :  { %v226_v8 = vmul.f32 %v222_v5, %v222_v5  ;;  %v227_v9 = vmul.f32 %v223_v6, %v223_v6  ;;  %v228_v10 = vmul.f32 %v224_v7, %v224_v7  ;;  %v229_v11 = vmul.f32 %v225_v4, %v225_v4 }
 0x1cd   :  { %v230_v13 = vsel %vm52_vm0, %v226_v8, 0.0  ;;  %v231_v14 = vsel %vm52_vm0, %v227_v9, 0.0  ;;  %v233_v16 = vsel %vm52_vm0, %v228_v10, 0.0  ;;  %v235_v18 = vsel %vm52_vm0, %v229_v11, 0.0 }
 0x1ce   :  { %v232_v15 = vadd.f32 %v231_v14, %v230_v13 }
 0x1d0   :  { %v234_v17 = vadd.f32 %v233_v16, %v232_v15 }
 0x1d2   :  { %v236_v19 = vadd.f32 %v235_v18, %v234_v17 }
 0x1d4   :  { %v237_v20 = vrot.slane %v236_v19, 4 }
 0x1d6   :  { %v238_v21 = vadd.f32 %v237_v20, %v236_v19 }
 0x1d8   :  { %v239_v22 = vrot.slane %v238_v21, 2 }
 0x1da   :  { %v240_v23 = vadd.f32 %v239_v22, %v238_v21 }
 0x1dc   :  { %v241_v24 = vrot.slane %v240_v23, 1 }
 0x1de   :  { %v242_v25 = vadd.f32 %v241_v24, %v240_v23 }
 0x1e0   :  { %v243_v26 = vmul.f32 %v242_v25, %v1360_v63 }
 0x1e2   :  { %v244_v27 = vadd.f32 1e-08, %v243_v26 }
 0x1e4   :  { %1192 = vrsqrt.f32 %v244_v27  ;;  %vm251_vm5 = vweird.f32 %v244_v27 }
 0x1ea   :  { %v1193_v30 = vpop.eup %1192 }
 0x1eb   :  { %v246_v31 = vmul.f32 %v1193_v30, %v244_v27  ;;  %vm252_vm4 = vweird.f32 %v1193_v30 }
 0x1ec   :  { %vm253_vm6 = vmor %vm251_vm5, %vm252_vm4 }
 0x1ed   :  { %v247_v32 = vmul.f32 %v1193_v30, %v246_v31 }
 0x1ef   :  { %v248_v33 = vmul.f32 0.5, %v247_v32 }
 0x1f1   :  { %v249_v34 = vsub.f32 1.5, %v248_v33 }
 0x1f3   :  { %v250_v35 = vmul.f32 %v1193_v30, %v249_v34 }
 0x1f5   :  { %v254_v36 = vsel %vm253_vm6, %v1193_v30, %v250_v35  ;;  %v1137_v30 = vld [vmem:[%s1476_s0 + $0x8] sm:$0xff] }
 0x1f6   :  { %v257_v37 = vmul.f32 %v254_v36, %v224_v7  ;;  %v258_v38 = vmul.f32 %v254_v36, %v225_v4  ;;  %v255_v39 = vmul.f32 %v254_v36, %v222_v5  ;;  %v256_v40 = vmul.f32 %v254_v36, %v223_v6 }
 0x1f7   :  { %v577_v31 = vpack.c.bf16 %v1137_v30, %v1137_v30 }
 0x1f8   :  { %v261_v41 = vmax.f32 %v257_v37, 0.0  ;;  %v262_v42 = vmax.f32 %v258_v38, 0.0  ;;  %v259_v44 = vmax.f32 %v255_v39, 0.0  ;;  %v260_v45 = vmax.f32 %v256_v40, 0.0 }
 0x1fa   :  { %v264_v43 = vpack.c.bf16 %v262_v42, %v261_v41  ;;  %v263_v46 = vpack.c.bf16 %v260_v45, %v259_v44 }
 0x1fc   :  { %315 = vmatpush.bf16.msrb.mxu1 %v264_v43 }
 0x200   :  { %316 = vmatpush.bf16.msrb.mxu1 %v263_v46 }
 0x203   :  { %1126 = vmatmul.msk.bf16.vlgmr.msrb.gmra.mxu1 %vm175_vm2, %v1175_v47 }
 0x204   :  { %444 = vmatpush.bf16.msra.mxu1 %v1302_v1 }
 0x208   :  { %636 = vmatpush.bf16.msrb.mxu1 %v1302_v1 }
 0x213   :  { %1127 = vmatmul.msk.bf16.gmra.mxu1 %vm175_vm2, %v1176_v12 }
 0x280   :  { %v318_v49 = vpop.f32.mrf.mxu1 }
 0x281   :  { %v319_v52 = vadd.f32 %v318_v49, %v276_v48 }
 0x288   :  { %v320_v51 = vpop.f32.mrf.mxu1 }
 0x289   :  { %v321_v53 = vadd.f32 %v320_v51, %v281_v50 }
 0x28b   :  { %v328_v54 = vpack.c.bf16 %v321_v53, %v319_v52 }
 0x28d   :  { %1128 = vmatmul.msk.bf16.vlgmr.msrb.gmra.mxu2 %vm52_vm0, %v328_v54  ;;  %1132 = vmatmul.msk.bf16.vlgmr.msra.gmra.mxu0 %vm52_vm0, %v328_v54 }
 0x28e   :  { %853 = vmatpush.bf16.msra.mxu0 %v1297_v0 }
 0x290   :  { %v323_v55 = vpop.f32.mrf.mxu1 }
 0x291   :  { %v324_v59 = vadd.f32 %v323_v55, %v286_v56 }
 0x298   :  { %v325_v58 = vpop.f32.mrf.mxu1 }
 0x299   :  { %v326_v60 = vadd.f32 %v325_v58, %v291_v57 }
 0x29b   :  { %v329_v61 = vpack.c.bf16 %v326_v60, %v324_v59  ;;  %v488_v59 = vld [vmem:[%s1483_s7] sm:$0xf] }
 0x29d   :  { %1129 = vmatmul.msk.bf16.gmra.mxu2 %vm52_vm0, %v329_v61  ;;  %1133 = vmatmul.msk.bf16.gmra.mxu0 %vm52_vm0, %v329_v61 }
 0x2ad   :  { %1140 = vmatmul.msk.bf16.vlgmr.msrb.gmra.mxu0 %vm52_vm0, %v577_v31 }
 0x30a   :  { %v407_v62 = vpop.f32.mrf.mxu0 }
 0x30b   :  { %v417_v3 = vpack.c.bf16 %v407_v62, %v407_v62 }
 0x30d   :  { %v425_v6 = vunpack.c.l.b16 %v417_v3 }
 0x310   :  { %v345_v2 = vpop.f32.mrf.mxu2 }
 0x311   :  { %v355_v8 = vpack.c.bf16 %v345_v2, %v345_v2  ;;  %v1230_v2 = vmov 8.0  }
 0x312   :  { %v409_v4 = vpop.f32.mrf.mxu0  ;;  %1194 = vrcp.f32 %v1230_v2 }
 0x313   :  { %v418_v5 = vpack.c.bf16 %v409_v4, %v409_v4  ;;  %v363_v14 = vunpack.c.l.b16 %v355_v8 }
 0x315   :  { %v426_v7 = vunpack.c.l.b16 %v418_v5  ;;  %v493_v5 = vpop.permute.xlu2 %492 }
 0x317   :  { %v429_v9 = vpack.c.b16 %v426_v7, %v425_v6 }
 0x318   :  { %v347_v10 = vpop.f32.mrf.mxu2  ;;  %v1195_v3 = vpop.eup %1194 }
 0x319   :  { %v356_v11 = vpack.c.bf16 %v347_v10, %v347_v10  ;;  %1134 = vmatmul.msk.bf16.vlgmr.msra.gmra.mxu1 %vm52_vm0, %v429_v9  ;;  %v516_v4 = vmul.f32 8.0, %v1195_v3  ;;  %vm520_vm7 = vweird.f32 %v1195_v3 }
 0x31a   :  { %v412_v13 = vpop.f32.mrf.mxu0  ;;  %892 = vmatpush.bf16.msra.mxu1 %v1297_v0 }
 0x31b   :  { %v364_v15 = vunpack.c.l.b16 %v356_v11  ;;  %v419_v18 = vpack.c.bf16 %v412_v13, %v412_v13  ;;  %v517_v8 = vsub.f32 1.0, %v516_v4 }
 0x31d   :  { %v367_v16 = vpack.c.b16 %v364_v15, %v363_v14  ;;  %v427_v21 = vunpack.c.l.b16 %v419_v18  ;;  %v518_v11 = vmul.f32 %v1195_v3, %v517_v8  ;;  %v671_v8 = vpop.permute.xlu1 %670 }
 0x31f   :  { %1130 = vmatmul.msk.bf16.vlgmr.msrb.gmra.mxu3 %vm52_vm0, %v367_v16 }
 0x320   :  { %v350_v17 = vpop.f32.mrf.mxu2 }
 0x321   :  { %v357_v23 = vpack.c.bf16 %v350_v17, %v350_v17 }
 0x322   :  { %v414_v19 = vpop.f32.mrf.mxu0 }
 0x323   :  { %v420_v20 = vpack.c.bf16 %v414_v19, %v414_v19  ;;  %v365_v27 = vunpack.c.l.b16 %v357_v23 }
 0x325   :  { %v428_v22 = vunpack.c.l.b16 %v420_v20 }
 0x327   :  { %v430_v24 = vpack.c.b16 %v428_v22, %v427_v21 }
 0x328   :  { %v352_v25 = vpop.f32.mrf.mxu2 }
 0x329   :  { %v358_v26 = vpack.c.bf16 %v352_v25, %v352_v25  ;;  %1135 = vmatmul.msk.bf16.gmra.mxu1 %vm52_vm0, %v430_v24 }
 0x32a   :  { %v621_v60 = vpop.f32.mrf.mxu0 }
 0x32b   :  { %v366_v28 = vunpack.c.l.b16 %v358_v26  ;;  %v625_v61 = vpack.c.bf16 %v621_v60, %v621_v60 }
 0x32d   :  { %v368_v29 = vpack.c.b16 %v366_v28, %v365_v27 }
 0x32f   :  { %1131 = vmatmul.msk.bf16.gmra.mxu3 %vm52_vm0, %v368_v29 }
 0x332   :  { %v623_v62 = vpop.f32.mrf.mxu0 }
 0x339   :  { %1141 = vmatmul.msk.bf16.vlgmr.msrb.gmra.mxu1 %vm52_vm0, %v625_v61 }
 0x396   :  { %v446_v32 = vpop.f32.mrf.mxu1 }
 0x397   :  { %v456_v41 = vpack.c.bf16 %v446_v32, %v446_v32 }
 0x399   :  { %v480_v47 = vunpack.c.l.b16 %v456_v41 }
 0x39e   :  { %v448_v33 = vpop.f32.mrf.mxu1 }
 0x39f   :  { %v457_v39 = vpack.c.bf16 %v448_v33, %v448_v33 }
 0x3a1   :  { %v481_v45 = vunpack.c.l.b16 %v457_v39 }
 0x3a2   :  { %v384_v34 = vpop.f32.mrf.mxu3 }
 0x3a3   :  { %v484_v12 = vpack.c.b16 %v481_v45, %v480_v47  ;;  %v394_v53 = vpack.c.bf16 %v384_v34, %v384_v34 }
 0x3a5   :  { %v466_v57 = vunpack.c.l.b16 %v394_v53  ;;  %v666_v53 = vpop.permute.xlu0 %665 }
 0x3a6   :  { %v451_v35 = vpop.f32.mrf.mxu1 }
 0x3a7   :  { %v458_v37 = vpack.c.bf16 %v451_v35, %v451_v35 }
 0x3a9   :  { %v482_v42 = vunpack.c.l.b16 %v458_v37 }
 0x3aa   :  { %v386_v36 = vpop.f32.mrf.mxu3 }
 0x3ab   :  { %v395_v51 = vpack.c.bf16 %v386_v36, %v386_v36 }
 0x3ad   :  { %v467_v55 = vunpack.c.l.b16 %v395_v51  ;;  %v547_v51 = vld [vmem:[%s1485_s9] sm:$0xf] }
 0x3ae   :  { %v453_v38 = vpop.f32.mrf.mxu1 }
 0x3af   :  { %v459_v40 = vpack.c.bf16 %v453_v38, %v453_v38  ;;  %v470_v58 = vpack.c.b16 %v467_v55, %v466_v57 }
 0x3b1   :  { %v483_v43 = vunpack.c.l.b16 %v459_v40 }
 0x3b2   :  { %v389_v44 = vpop.f32.mrf.mxu3 }
 0x3b3   :  { %v485_v46 = vpack.c.b16 %v483_v43, %v482_v42  ;;  %v396_v50 = vpack.c.bf16 %v389_v44, %v389_v44 }
 0x3b5   :  { %495 = vmatpush.bf16.msra.mxu2 %v485_v46  ;;  %v468_v54 = vunpack.c.l.b16 %v396_v50 }
 0x3b6   :  { %v638_v37 = vpop.f32.mrf.mxu1 }
 0x3b7   :  { %v642_v38 = vpack.c.bf16 %v638_v37, %v638_v37 }
 0x3b9   :  { %496 = vmatpush.bf16.msra.mxu2 %v484_v12  ;;  %v647_v40 = vunpack.c.l.b16 %v642_v38 }
 0x3ba   :  { %v391_v48 = vpop.f32.mrf.mxu3 }
 0x3bb   :  { %v397_v49 = vpack.c.bf16 %v391_v48, %v391_v48  ;;  %v648_v42 = vpack.c.b16 %v647_v40, %v647_v40 }
 0x3bd   :  { %497 = vmatpush.bf16.msra.mxu2 %v430_v24  ;;  %v469_v52 = vunpack.c.l.b16 %v397_v49  ;;  %v653_v44 = vsel %vm130_vm1, %v625_v61, %v648_v42 }
 0x3be   :  { %v640_v46 = vpop.f32.mrf.mxu1 }
 0x3bf   :  { %v471_v56 = vpack.c.b16 %v469_v52, %v468_v54  ;;  %v681_v54 = vpop.permute.xlu0 %680 }
 0x3c1   :  { %498 = vmatpush.bf16.msra.mxu2 %v429_v9 }
 0x3c5   :  { %499 = vmatpush.bf16.msra.mxu2 %v471_v56 }
 0x3c7   :  { %v1419_v55 = vpop.permute.xlu0 %795 }
 0x3c9   :  { %500 = vmatpush.bf16.msra.mxu2 %v470_v58 }
 0x3cd   :  { %501 = vmatpush.bf16.msra.mxu2 %v368_v29 }
 0x3cf   :  { %v552_v56 = vpop.permute.xlu0 %551 }
 0x3d1   :  { %502 = vmatpush.bf16.msra.mxu2 %v367_v16  ;;  %v519_v16 = vadd.f32 %v1195_v3, %v518_v11  ;;  %v676_v11 = vpop.permute.xlu2 %675 }
 0x3d3   :  { %v1406_v19 = vsel %vm520_vm7, %v1195_v3, %v519_v16  ;;  %v1177_v3 = vld [vmem:[%s1479_s3] sm:$0xff] }
 0x3d4   :  { %503 = vmatmul.bf16.vlgmr.msra.gmra.mxu2 %v488_v59 }
 0x3d5   :  { %588 = vmatpush.bf16.msrb.mxu2 %v1297_v0 }
 0x3d9   :  { %705 = vmatpush.bf16.msra.mxu2 %v653_v44 }
 0x3e4   :  { %1138 = vmatmul.msk.bf16.vlgmr.msrb.gmra.mxu2 %vm52_vm0, %v577_v31 }
 0x457   :  { %v504_v6 = vpop.f32.mrf.mxu2 }
 0x458   :  { %v505_v7 = vadd.f32 %v504_v6, %v493_v5  ;;  %v1178_v5 = vld [vmem:[%s1479_s3 + $0x8] sm:$0xff] }
 0x45a   :  { %v508_v9 = vsel %vm52_vm0, %v505_v7, 0.0 }
 0x45b   :  { %v509_v10 = vrot.slane %v508_v9, 4 }
 0x45d   :  { %v510_v13 = vadd.f32 %v509_v10, %v508_v9 }
 0x45f   :  { %v511_v14 = vrot.slane %v510_v13, 2  ;;  %v506_v15 = vpop.f32.mrf.mxu2 }
 0x461   :  { %v512_v17 = vadd.f32 %v511_v14, %v510_v13 }
 0x463   :  { %v513_v18 = vrot.slane %v512_v17, 1 }
 0x465   :  { %v514_v20 = vadd.f32 %v513_v18, %v512_v17 }
 0x467   :  { %v522_v21 = vmul.f32 %v1406_v19, %v514_v20  ;;  %v590_v32 = vpop.f32.mrf.mxu2 }
 0x468   :  { %v594_v52 = vpack.c.bf16 %v590_v32, %v590_v32 }
 0x469   :  { %v523_v22 = vsub.f32 %v505_v7, %v522_v21 }
 0x46b   :  { %v524_v23 = vmul.f32 %v523_v22, %v523_v22 }
 0x46d   :  { %v525_v24 = vsel %vm52_vm0, %v524_v23, 0.0 }
 0x46e   :  { %v526_v25 = vrot.slane %v525_v24, 4 }
 0x46f   :  { %v592_v34 = vpop.f32.mrf.mxu2 }
 0x470   :  { %v527_v26 = vadd.f32 %v526_v25, %v525_v24 }
 0x472   :  { %v528_v27 = vrot.slane %v527_v26, 2 }
 0x474   :  { %v529_v28 = vadd.f32 %v528_v27, %v527_v26 }
 0x476   :  { %v530_v29 = vrot.slane %v529_v28, 1 }
 0x478   :  { %v531_v30 = vadd.f32 %v530_v29, %v529_v28 }
 0x47a   :  { %v532_v31 = vmul.f32 %v531_v30, %v1406_v19 }
 0x47c   :  { %v533_v33 = vadd.f32 1e-08, %v532_v31 }
 0x47e   :  { %1196 = vrsqrt.f32 %v533_v33  ;;  %vm540_vm9 = vweird.f32 %v533_v33 }
 0x484   :  { %v1197_v35 = vpop.eup %1196 }
 0x485   :  { %v535_v36 = vmul.f32 %v1197_v35, %v533_v33  ;;  %vm541_vm8 = vweird.f32 %v1197_v35 }
 0x486   :  { %vm542_vm10 = vmor %vm540_vm9, %vm541_vm8 }
 0x487   :  { %v536_v39 = vmul.f32 %v1197_v35, %v535_v36 }
 0x489   :  { %v537_v41 = vmul.f32 0.5, %v536_v39 }
 0x48b   :  { %v538_v43 = vsub.f32 1.5, %v537_v41 }
 0x48d   :  { %v539_v45 = vmul.f32 %v1197_v35, %v538_v43 }
 0x48f   :  { %v543_v47 = vsel %vm542_vm10, %v1197_v35, %v539_v45 }
 0x490   :  { %v544_v12 = vmul.f32 %v543_v47, %v523_v22 }
 0x492   :  { %v545_v48 = vmax.f32 %v544_v12, 0.0 }
 0x494   :  { %v546_v49 = vpack.c.bf16 %v545_v48, %v545_v48 }
 0x496   :  { %v559_v50 = vsel %vm130_vm1, %v546_v49, 0 }
 0x497   :  { %568 = vmatpush.bf16.msra.mxu3 %v559_v50 }
 0x49a   :  { %1136 = vmatmul.msk.bf16.vlgmr.msra.gmra.mxu3 %vm554_vm11, %v547_v51 }
 0x49b   :  { %605 = vmatpush.bf16.msrb.mxu3 %v1297_v0 }
 0x4aa   :  { %1139 = vmatmul.msk.bf16.vlgmr.msrb.gmra.mxu3 %vm52_vm0, %v594_v52 }
 0x51d   :  { %v570_v57 = vpop.f32.mrf.mxu3 }
 0x51e   :  { %v571_v58 = vadd.f32 %v570_v57, %v552_v56 }
 0x520   :  { %574 = vst.msk [vmem:[#allocation2] sm:$0xff] %vm52_vm0, %v571_v58 }
 0x525   :  { %v572_v59 = vpop.f32.mrf.mxu3 }
 0x52d   :  { %v607_v60 = vpop.f32.mrf.mxu3 }
 0x52e   :  { %v611_v61 = vpack.c.bf16 %v607_v60, %v607_v60 }
 0x530   :  { %v644_v62 = vunpack.c.l.b16 %v611_v61 }
 0x532   :  { %v645_v2 = vpack.c.b16 %v644_v62, %v644_v62 }
 0x534   :  { %v650_v0 = vsel %vm130_vm1, %v594_v52, %v645_v2 }
 0x535   :  { %v609_v4 = vpop.f32.mrf.mxu3  ;;  %706 = vmatpush.bf16.msra.mxu2 %v650_v0 }
 0x538   :  { %1150 = vmatmul.msk.bf16.vlgmr.msra.gmra.mxu2 %vm175_vm2, %v1177_v3 }
 0x539   :  { %915 = vmatpush.bf16.msrb.mxu2 %v1302_v1 }
 0x548   :  { %1151 = vmatmul.msk.bf16.gmra.mxu2 %vm175_vm2, %v1178_v5 }
 0x5bb   :  { %v708_v6 = vpop.f32.mrf.mxu2 }
 0x5bc   :  { %v709_v13 = vadd.f32 %v708_v6, %v666_v53 }
 0x5be   :  { %v718_v16 = vsel %vm52_vm0, %v709_v13, 0.0 }
 0x5c3   :  { %v710_v7 = vpop.f32.mrf.mxu2 }
 0x5c4   :  { %v711_v10 = vadd.f32 %v710_v7, %v671_v8 }
 0x5c6   :  { %v719_v15 = vsel %vm52_vm0, %v711_v10, 0.0 }
 0x5c7   :  { %v720_v18 = vadd.f32 %v719_v15, %v718_v16 }
 0x5cb   :  { %v713_v9 = vpop.f32.mrf.mxu2 }
 0x5cc   :  { %v714_v14 = vadd.f32 %v713_v9, %v676_v11  ;;  %v1179_v9 = vld [vmem:[%s1481_s5] sm:$0xff] }
 0x5ce   :  { %v721_v17 = vsel %vm52_vm0, %v714_v14, 0.0 }
 0x5cf   :  { %v722_v22 = vadd.f32 %v721_v17, %v720_v18 }
 0x5d3   :  { %v715_v20 = vpop.f32.mrf.mxu2 }
 0x5d4   :  { %v716_v21 = vadd.f32 %v715_v20, %v681_v54 }
 0x5d6   :  { %v723_v23 = vsel %vm52_vm0, %v716_v21, 0.0 }
 0x5d7   :  { %v724_v24 = vadd.f32 %v723_v23, %v722_v22 }
 0x5d9   :  { %v725_v25 = vrot.slane %v724_v24, 4 }
 0x5db   :  { %v726_v26 = vadd.f32 %v725_v25, %v724_v24 }
 0x5dd   :  { %v727_v27 = vrot.slane %v726_v26, 2 }
 0x5df   :  { %v728_v28 = vadd.f32 %v727_v27, %v726_v26 }
 0x5e1   :  { %v729_v29 = vrot.slane %v728_v28, 1 }
 0x5e3   :  { %v730_v30 = vadd.f32 %v729_v29, %v728_v28 }
 0x5e5   :  { %v731_v31 = vmul.f32 %v730_v30, %v1360_v63 }
 0x5e7   :  { %v732_v32 = vsub.f32 %v709_v13, %v731_v31  ;;  %v733_v33 = vsub.f32 %v711_v10, %v731_v31  ;;  %v734_v34 = vsub.f32 %v714_v14, %v731_v31  ;;  %v735_v35 = vsub.f32 %v716_v21, %v731_v31  ;;  %v1180_v10 = vld [vmem:[%s1481_s5 + $0x8] sm:$0xff]  ;;  %v786_v13 = vpop.permute.xlu1 %785  ;;  %v791_v14 = vpop.permute.xlu2 %790 }
 0x5e9   :  { %v736_v36 = vmul.f32 %v732_v32, %v732_v32  ;;  %v737_v37 = vmul.f32 %v733_v33, %v733_v33  ;;  %v738_v38 = vmul.f32 %v734_v34, %v734_v34  ;;  %v739_v39 = vmul.f32 %v735_v35, %v735_v35 }
 0x5eb   :  { %v740_v40 = vsel %vm52_vm0, %v736_v36, 0.0  ;;  %v741_v41 = vsel %vm52_vm0, %v737_v37, 0.0  ;;  %v743_v43 = vsel %vm52_vm0, %v738_v38, 0.0  ;;  %v745_v45 = vsel %vm52_vm0, %v739_v39, 0.0 }
 0x5ec   :  { %v742_v42 = vadd.f32 %v741_v41, %v740_v40 }
 0x5ee   :  { %v744_v44 = vadd.f32 %v743_v43, %v742_v42 }
 0x5ef   :  { %v801_v20 = vpop.permute.xlu1 %800 }
 0x5f0   :  { %v746_v46 = vadd.f32 %v745_v45, %v744_v44 }
 0x5f2   :  { %v747_v47 = vrot.slane %v746_v46, 4 }
 0x5f4   :  { %v748_v12 = vadd.f32 %v747_v47, %v746_v46 }
 0x5f6   :  { %v749_v48 = vrot.slane %v748_v12, 2 }
 0x5f8   :  { %v750_v49 = vadd.f32 %v749_v48, %v748_v12 }
 0x5fa   :  { %v751_v50 = vrot.slane %v750_v49, 1 }
 0x5fc   :  { %v752_v51 = vadd.f32 %v751_v50, %v750_v49 }
 0x5fe   :  { %v753_v52 = vmul.f32 %v752_v51, %v1360_v63 }
 0x600   :  { %v754_v53 = vadd.f32 1e-08, %v753_v52 }
 0x602   :  { %1198 = vrsqrt.f32 %v754_v53  ;;  %vm761_vm13 = vweird.f32 %v754_v53 }
 0x608   :  { %v1199_v54 = vpop.eup %1198 }
 0x609   :  { %v756_v56 = vmul.f32 %v1199_v54, %v754_v53  ;;  %vm762_vm12 = vweird.f32 %v1199_v54 }
 0x60a   :  { %vm763_vm14 = vmor %vm761_vm13, %vm762_vm12 }
 0x60b   :  { %v757_v57 = vmul.f32 %v1199_v54, %v756_v56 }
 0x60d   :  { %v758_v58 = vmul.f32 0.5, %v757_v57 }
 0x60f   :  { %v759_v59 = vsub.f32 1.5, %v758_v58 }
 0x611   :  { %v760_v60 = vmul.f32 %v1199_v54, %v759_v59 }
 0x613   :  { %v764_v61 = vsel %vm763_vm14, %v1199_v54, %v760_v60 }
 0x614   :  { %v767_v62 = vmul.f32 %v764_v61, %v734_v34  ;;  %v768_v2 = vmul.f32 %v764_v61, %v735_v35  ;;  %v765_v0 = vmul.f32 %v764_v61, %v732_v32  ;;  %v766_v3 = vmul.f32 %v764_v61, %v733_v33 }
 0x616   :  { %v771_v4 = vmax.f32 %v767_v62, 0.0  ;;  %v772_v5 = vmax.f32 %v768_v2, 0.0  ;;  %v769_v63 = vmax.f32 %v765_v0, 0.0  ;;  %v770_v7 = vmax.f32 %v766_v3, 0.0 }
 0x618   :  { %v774_v6 = vpack.c.bf16 %v772_v5, %v771_v4  ;;  %v773_v8 = vpack.c.bf16 %v770_v7, %v769_v63 }
 0x61a   :  { %825 = vmatpush.bf16.msra.mxu3 %v774_v6 }
 0x61e   :  { %826 = vmatpush.bf16.msra.mxu3 %v773_v8 }
 0x621   :  { %1160 = vmatmul.msk.bf16.vlgmr.msra.gmra.mxu3 %vm175_vm2, %v1179_v9 }
 0x622   :  { %954 = vmatpush.bf16.msrb.mxu3 %v1302_v1 }
 0x631   :  { %1161 = vmatmul.msk.bf16.gmra.mxu3 %vm175_vm2, %v1180_v10 }
 0x6a4   :  { %v828_v11 = vpop.f32.mrf.mxu3 }
 0x6a5   :  { %v829_v16 = vadd.f32 %v828_v11, %v786_v13 }
 0x6ac   :  { %v830_v15 = vpop.f32.mrf.mxu3 }
 0x6ad   :  { %v831_v17 = vadd.f32 %v830_v15, %v791_v14 }
 0x6af   :  { %v838_v18 = vpack.c.bf16 %v831_v17, %v829_v16 }
 0x6b1   :  { %1162 = vmatmul.msk.bf16.vlgmr.msra.gmra.mxu0 %vm52_vm0, %v838_v18  ;;  %1166 = vmatmul.msk.bf16.vlgmr.msrb.gmra.mxu2 %vm52_vm0, %v838_v18  ;;  %v998_v18 = vld [vmem:[%s1483_s7] sm:$0xf] }
 0x6b4   :  { %v833_v1 = vpop.f32.mrf.mxu3 }
 0x6b5   :  { %v834_v22 = vadd.f32 %v833_v1, %v1419_v55  ;;  %v1003_v1 = vpop.permute.xlu2 %1002 }
 0x6bc   :  { %v835_v21 = vpop.f32.mrf.mxu3 }
 0x6bd   :  { %v836_v23 = vadd.f32 %v835_v21, %v801_v20 }
 0x6bf   :  { %v839_v24 = vpack.c.bf16 %v836_v23, %v834_v22 }
 0x6c1   :  { %1163 = vmatmul.msk.bf16.gmra.mxu0 %vm52_vm0, %v839_v24  ;;  %1167 = vmatmul.msk.bf16.gmra.mxu2 %vm52_vm0, %v839_v24 }
 0x72e   :  { %v855_v25 = vpop.f32.mrf.mxu0 }
 0x72f   :  { %v865_v27 = vpack.c.bf16 %v855_v25, %v855_v25 }
 0x731   :  { %v873_v30 = vunpack.c.l.b16 %v865_v27 }
 0x734   :  { %v917_v26 = vpop.f32.mrf.mxu2 }
 0x735   :  { %v927_v32 = vpack.c.bf16 %v917_v26, %v917_v26 }
 0x736   :  { %v857_v28 = vpop.f32.mrf.mxu0 }
 0x737   :  { %v866_v29 = vpack.c.bf16 %v857_v28, %v857_v28  ;;  %v935_v36 = vunpack.c.l.b16 %v927_v32 }
 0x739   :  { %v874_v31 = vunpack.c.l.b16 %v866_v29 }
 0x73b   :  { %v877_v33 = vpack.c.b16 %v874_v31, %v873_v30 }
 0x73c   :  { %v919_v34 = vpop.f32.mrf.mxu2 }
 0x73d   :  { %v928_v35 = vpack.c.bf16 %v919_v34, %v919_v34  ;;  %1164 = vmatmul.msk.bf16.vlgmr.msra.gmra.mxu1 %vm52_vm0, %v877_v33 }
 0x73e   :  { %v860_v55 = vpop.f32.mrf.mxu0 }
 0x73f   :  { %v936_v37 = vunpack.c.l.b16 %v928_v35  ;;  %v867_v40 = vpack.c.bf16 %v860_v55, %v860_v55 }
 0x741   :  { %v939_v38 = vpack.c.b16 %v936_v37, %v935_v36  ;;  %v875_v43 = vunpack.c.l.b16 %v867_v40 }
 0x743   :  { %1168 = vmatmul.msk.bf16.vlgmr.msrb.gmra.mxu3 %vm52_vm0, %v939_v38 }
 0x744   :  { %v922_v39 = vpop.f32.mrf.mxu2 }
 0x745   :  { %v929_v45 = vpack.c.bf16 %v922_v39, %v922_v39 }
 0x746   :  { %v862_v41 = vpop.f32.mrf.mxu0 }
 0x747   :  { %v868_v42 = vpack.c.bf16 %v862_v41, %v862_v41  ;;  %v937_v48 = vunpack.c.l.b16 %v929_v45 }
 0x749   :  { %v876_v44 = vunpack.c.l.b16 %v868_v42 }
 0x74b   :  { %v878_v46 = vpack.c.b16 %v876_v44, %v875_v43 }
 0x74c   :  { %v924_v47 = vpop.f32.mrf.mxu2 }
 0x74d   :  { %v930_v12 = vpack.c.bf16 %v924_v47, %v924_v47  ;;  %1165 = vmatmul.msk.bf16.gmra.mxu1 %vm52_vm0, %v878_v46 }
 0x74f   :  { %v938_v49 = vunpack.c.l.b16 %v930_v12 }
 0x751   :  { %v940_v50 = vpack.c.b16 %v938_v49, %v937_v48 }
 0x753   :  { %1169 = vmatmul.msk.bf16.gmra.mxu3 %vm52_vm0, %v940_v50 }
 0x7ba   :  { %v894_v52 = vpop.f32.mrf.mxu1 }
 0x7bb   :  { %v904_v11 = vpack.c.bf16 %v894_v52, %v894_v52 }
 0x7bd   :  { %v976_v16 = vunpack.c.l.b16 %v904_v11 }
 0x7c2   :  { %v896_v54 = vpop.f32.mrf.mxu1 }
 0x7c3   :  { %v905_v9 = vpack.c.bf16 %v896_v54, %v896_v54 }
 0x7c5   :  { %v977_v14 = vunpack.c.l.b16 %v905_v9 }
 0x7c6   :  { %v956_v51 = vpop.f32.mrf.mxu3 }
 0x7c7   :  { %v966_v62 = vpack.c.bf16 %v956_v51, %v956_v51  ;;  %v980_v17 = vpack.c.b16 %v977_v14, %v976_v16  ;;  %v1055_v51 = vpop.permute.xlu1 %1054 }
 0x7c9   :  { %v990_v5 = vunpack.c.l.b16 %v966_v62 }
 0x7ca   :  { %v899_v58 = vpop.f32.mrf.mxu1 }
 0x7cb   :  { %v906_v8 = vpack.c.bf16 %v899_v58, %v899_v58 }
 0x7cd   :  { %v978_v13 = vunpack.c.l.b16 %v906_v8 }
 0x7ce   :  { %v958_v53 = vpop.f32.mrf.mxu3 }
 0x7cf   :  { %v967_v60 = vpack.c.bf16 %v958_v53, %v958_v53 }
 0x7d1   :  { %v991_v3 = vunpack.c.l.b16 %v967_v60 }
 0x7d2   :  { %v901_v63 = vpop.f32.mrf.mxu1 }
 0x7d3   :  { %v994_v6 = vpack.c.b16 %v991_v3, %v990_v5  ;;  %v907_v7 = vpack.c.bf16 %v901_v63, %v901_v63 }
 0x7d5   :  { %v979_v10 = vunpack.c.l.b16 %v907_v7 }
 0x7d6   :  { %v961_v56 = vpop.f32.mrf.mxu3 }
 0x7d7   :  { %v968_v57 = vpack.c.bf16 %v961_v56, %v961_v56  ;;  %v981_v15 = vpack.c.b16 %v979_v10, %v978_v13 }
 0x7d9   :  { %v992_v2 = vunpack.c.l.b16 %v968_v57 }
 0x7de   :  { %v963_v59 = vpop.f32.mrf.mxu3 }
 0x7df   :  { %v969_v61 = vpack.c.bf16 %v963_v59, %v963_v59 }
 0x7e1   :  { %v993_v0 = vunpack.c.l.b16 %v969_v61 }
 0x7e3   :  { %v995_v4 = vpack.c.b16 %v993_v0, %v992_v2 }
 0x7e5   :  { %1005 = vmatpush.bf16.msrb.mxu0 %v995_v4 }
 0x7e9   :  { %1006 = vmatpush.bf16.msrb.mxu0 %v994_v6 }
 0x7ed   :  { %1007 = vmatpush.bf16.msrb.mxu0 %v940_v50 }
 0x7f1   :  { %1008 = vmatpush.bf16.msrb.mxu0 %v939_v38 }
 0x7f5   :  { %1009 = vmatpush.bf16.msrb.mxu0 %v981_v15 }
 0x7f9   :  { %1010 = vmatpush.bf16.msrb.mxu0 %v980_v17 }
 0x7fd   :  { %1011 = vmatpush.bf16.msrb.mxu0 %v878_v46 }
 0x801   :  { %1012 = vmatpush.bf16.msrb.mxu0 %v877_v33 }
 0x804   :  { %1013 = vmatmul.bf16.vlgmr.msrb.gmra.mxu0 %v998_v18 }
 0x881   :  { %v1014_v20 = vpop.f32.mrf.mxu0 }
 0x882   :  { %v1015_v21 = vadd.f32 %v1014_v20, %v1003_v1 }
 0x884   :  { %v1018_v22 = vsel %vm52_vm0, %v1015_v21, 0.0 }
 0x885   :  { %v1019_v23 = vrot.slane %v1018_v22, 4 }
 0x887   :  { %v1020_v24 = vadd.f32 %v1019_v23, %v1018_v22 }
 0x889   :  { %v1021_v25 = vrot.slane %v1020_v24, 2  ;;  %v1016_v26 = vpop.f32.mrf.mxu0 }
 0x88b   :  { %v1022_v27 = vadd.f32 %v1021_v25, %v1020_v24 }
 0x88d   :  { %v1023_v28 = vrot.slane %v1022_v27, 1 }
 0x88f   :  { %v1024_v29 = vadd.f32 %v1023_v28, %v1022_v27 }
 0x891   :  { %v1025_v30 = vmul.f32 %v1024_v29, %v1406_v19 }
 0x893   :  { %v1026_v31 = vsub.f32 %v1015_v21, %v1025_v30 }
 0x895   :  { %v1027_v32 = vmul.f32 %v1026_v31, %v1026_v31 }
 0x897   :  { %v1028_v33 = vsel %vm52_vm0, %v1027_v32, 0.0 }
 0x898   :  { %v1029_v34 = vrot.slane %v1028_v33, 4 }
 0x89a   :  { %v1030_v35 = vadd.f32 %v1029_v34, %v1028_v33 }
 0x89c   :  { %v1031_v55 = vrot.slane %v1030_v35, 2 }
 0x89e   :  { %v1032_v36 = vadd.f32 %v1031_v55, %v1030_v35 }
 0x8a0   :  { %v1033_v37 = vrot.slane %v1032_v36, 1 }
 0x8a2   :  { %v1034_v38 = vadd.f32 %v1033_v37, %v1032_v36 }
 0x8a4   :  { %v1035_v39 = vmul.f32 %v1034_v38, %v1406_v19  ;;  %v1050_v19 = vld [vmem:[%s1485_s9] sm:$0xf] }
 0x8a6   :  { %v1036_v40 = vadd.f32 1e-08, %v1035_v39 }
 0x8a8   :  { %1200 = vrsqrt.f32 %v1036_v40  ;;  %vm1043_vm2 = vweird.f32 %v1036_v40 }
 0x8ae   :  { %v1201_v41 = vpop.eup %1200 }
 0x8af   :  { %v1038_v42 = vmul.f32 %v1201_v41, %v1036_v40  ;;  %vm1044_vm15 = vweird.f32 %v1201_v41 }
 0x8b0   :  { %vm1045_vm3 = vmor %vm1043_vm2, %vm1044_vm15 }
 0x8b1   :  { %v1039_v43 = vmul.f32 %v1201_v41, %v1038_v42 }
 0x8b3   :  { %v1040_v44 = vmul.f32 0.5, %v1039_v43 }
 0x8b5   :  { %v1041_v45 = vsub.f32 1.5, %v1040_v44 }
 0x8b7   :  { %v1042_v46 = vmul.f32 %v1201_v41, %v1041_v45 }
 0x8b9   :  { %v1046_v47 = vsel %vm1045_vm3, %v1201_v41, %v1042_v46 }
 0x8ba   :  { %v1047_v12 = vmul.f32 %v1046_v47, %v1026_v31 }
 0x8bc   :  { %v1048_v48 = vmax.f32 %v1047_v12, 0.0 }
 0x8be   :  { %v1049_v49 = vpack.c.bf16 %v1048_v48, %v1048_v48 }
 0x8c0   :  { %v1061_v50 = vsel %vm130_vm1, %v1049_v49, 0 }
 0x8c1   :  { %1070 = vmatpush.bf16.msrb.mxu1 %v1061_v50 }
 0x8c4   :  { %1170 = vmatmul.msk.bf16.vlgmr.msrb.gmra.mxu1 %vm554_vm11, %v1050_v19 }
 0x941   :  { %v1072_v52 = vpop.f32.mrf.mxu1 }
 0x942   :  { %v1073_v53 = vadd.f32 %v1072_v52, %v1055_v51 }
 0x944   :  { %1077 = vst.msk [vmem:[#allocation2 + $0x8] sm:$0xff] %vm52_vm0, %v1073_v53 }
 0x945   :  { %1090 = dma.vmem_to_hbm [thread:$0]  %s1083_s10, 256, %s1085_s21, [#allocation3], %s1232_s22, %s1232_s22, %s1233_s1  }
 0x949   :  { %v1074_v54 = vpop.f32.mrf.mxu1 }
 0x94a   :  { %1226 = dma.done.wait [#allocation3], 256  }
 0x94b   :  { %1227 = vsyncadd [#allocation3], 4294967040 }
 0x94c   :  { %1095 = vsyncpa [#allocation3], 1 }

</bundles_post_ra>
